<compile_context>
chip_gen: v7x
topology: tpu7x:2x2x1
jax: 0.10.0
libtpu: 0.0.40
codegen_flags: <defaults>
</compile_context>

<pallas_src>
import functools

import jax
import jax.numpy as jnp
import numpy as np
from jax.experimental import pallas as pl
from jax.experimental.pallas import tpu as pltpu

# (ky, kx) of the single "1" in each of the 9 fixed conv kernels, in the order
# the PyTorch module concatenates them (kernel_12 duplicates kernel_22).
_SHIFTS = ((0, 0), (1, 0), (2, 0),
           (0, 1), (1, 1), (2, 2),
           (0, 2), (1, 2), (2, 2))

# Devillard minimal median-of-9 network: 19 compare-exchanges.
# Each pair (i, j) enforces p[i] <= p[j]; the median ends up in p[4].
_MED9_CES = ((1, 2), (4, 5), (7, 8),
             (0, 1), (3, 4), (6, 7),
             (1, 2), (4, 5), (7, 8),
             (0, 3), (5, 8), (4, 7),
             (3, 6), (1, 4), (2, 5),
             (4, 7), (4, 2), (6, 4),
             (4, 2))


def _median9(planes):
    """Elementwise median of 9 arrays via the 19-CE comparator network."""
    p = list(planes)
    for i, j in _MED9_CES:
        a, b = p[i], p[j]
        p[i] = jnp.minimum(a, b)
        p[j] = jnp.maximum(a, b)
    return p[4]


def _lmf_kernel(x_ref, e_ref, *, img_w, n_pack):
    """One grid step = one group of `n_pack` images packed along lanes.

    x_ref : (1, 3, H, GW)  original RGB pixels, GW = n_pack * img_w
    e_ref : (1, 1, H, GW)  summed squared median-filter error
    """
    H = e_ref.shape[2]
    GW = e_ref.shape[3]
    dt = x_ref.dtype

    # Hoisted constants (JAX does not CSE broadcasts inside the unrolled loop).
    zrow = jnp.zeros((1, GW), dt)
    zcol = jnp.zeros((H, 1), dt)
    if n_pack > 1:
        # Per-image left/right edge masks so lane packing cannot leak pixels
        # across image seams (they must see the zero halo instead).
        col = jax.lax.broadcasted_iota(jnp.int32, (H, GW), 1) % img_w
        left_edge = col == 0
        right_edge = col == (img_w - 1)

    def up(v):      # D[y] = v[y-1], zero halo at y == 0
        return jnp.concatenate([zrow, v[:-1, :]], axis=0)

    def down(v):    # D[y] = v[y+1], zero halo at y == H-1
        return jnp.concatenate([v[1:, :], zrow], axis=0)

    acc = jnp.zeros((H, GW), jnp.float32)
    for c in range(3):                               # unrolled channel loop
        xc = x_ref[0, c]                             # (H, GW), input dtype
        cL = jnp.concatenate([zcol, xc[:, :-1]], axis=1)   # org[:, x-1]
        cR = jnp.concatenate([xc[:, 1:], zcol], axis=1)    # org[:, x+1]
        if n_pack > 1:
            cL = jnp.where(left_edge, jnp.zeros_like(cL), cL)
            cR = jnp.where(right_edge, jnp.zeros_like(cR), cR)

        dcr = down(cR)                               # the duplicated (2,2) plane
        planes = (up(cL), cL, down(cL),              # (0,0) (1,0) (2,0)
                  up(xc), xc, dcr,                   # (0,1) (1,1) (2,2)
                  up(cR), cR, dcr)                   # (0,2) (1,2) (2,2)

        # Comparator network in the input dtype (bf16 stays bf16 on v6e/v7x).
        med = _median9(planes)
        d = med.astype(jnp.float32) - xc.astype(jnp.float32)
        acc = acc + d * d

    e_ref[0, 0] = acc.astype(e_ref.dtype)


def _round_up(a, b):
    return -(-a // b) * b


def l_mf(org):
    """Pallas implementation of L_MF.forward.  org: (N, 3, H, W)."""
    N, C, H, W = org.shape
    assert C == 3, "L_MF expects a 3-channel (RGB) input"

    # Lane-dense packing of narrow images: pack G batch images along lanes.
    if W < 128:
        G = max(1, min(N, 128 // W))
        while N % G:
            G -= 1
    else:
        G = 1
    NG = N // G
    GW = G * W

    if G > 1:
        x = org.reshape(NG, G, 3, H, W).transpose(0, 2, 3, 1, 4).reshape(NG, 3, H, GW)
    else:
        x = org

    # --- VMEM budget: (8,128)-tile-padded footprints, generation-aware cap ---
    isz = jnp.dtype(org.dtype).itemsize
    sub = max(8, 32 // max(isz, 1))               # sublane rows per tile for dtype
    Hp = _round_up(H, sub)
    Wp = _round_up(GW, 128)
    Hp32 = _round_up(H, 8)
    in_blk = 3 * Hp * Wp * isz                    # one input block
    out_blk = Hp * Wp * isz                       # one output block
    temps = 16 * Hp * Wp * isz + 2 * Hp32 * Wp * 4   # live planes + f32 acc/diff
    need = 2 * in_blk + 2 * out_blk + temps + (4 << 20)

    try:
        phys = int(pltpu.get_tpu_info().vmem_capacity_bytes)
    except Exception:
        phys = 64 << 20                           # conservative (v7x) fallback
    cap = (phys * 3) // 4                         # ~48 MiB v7x, ~96 MiB v5e/v6e
    vmem_limit = int(min(max(need, 32 << 20), cap))

    # Advisory cost: ~9 shift/mask ops + 38 min/max + ~4 diff/acc per px/chan.
    cost = pl.CostEstimate(
        flops=int(3 * 55 * N * H * W),
        transcendentals=0,
        bytes_accessed=int((3 + 1) * N * H * W * isz))

    kernel = functools.partial(_lmf_kernel, img_w=W, n_pack=G)
    out = pl.pallas_call(
        kernel,
        out_shape=jax.ShapeDtypeStruct((NG, 1, H, GW), org.dtype),
        grid_spec=pltpu.PrefetchScalarGridSpec(
            num_scalar_prefetch=0,
            grid=(NG,),
            in_specs=[pl.BlockSpec((1, 3, H, GW), lambda n: (n, 0, 0, 0))],
            out_specs=pl.BlockSpec((1, 1, H, GW), lambda n: (n, 0, 0, 0)),
        ),
        compiler_params=pltpu.CompilerParams(
            dimension_semantics=("parallel",),
            vmem_limit_bytes=vmem_limit),
        cost_estimate=cost,
    )(x)

    if G > 1:
        out = out.reshape(NG, 1, H, G, W).transpose(0, 3, 1, 2, 4).reshape(N, 1, H, W)
    return out


def _l_mf_reference(org):
    """Pure-JAX reference for correctness checking (matches the PyTorch module)."""
    N, C, H, W = org.shape
    pad = jnp.pad(org, ((0, 0), (0, 0), (1, 1), (1, 1)))
    e = jnp.zeros((N, 1, H, W), org.dtype)
    for c in range(3):
        planes = jnp.stack(
            [pad[:, c, ky:ky + H, kx:kx + W] for (ky, kx) in _SHIFTS], axis=1)
        med = jnp.sort(planes, axis=1)[:, 4:5]   # middle element of 9
        e = e + (med - org[:, c:c + 1]) ** 2
    return e


if __name__ == "__main__":
    key = jax.random.PRNGKey(0)
    x = jax.random.uniform(key, (2, 3, 16, 16), dtype=jnp.float32)

    out = jax.block_until_ready(jax.jit(l_mf)(x))
    ref = jax.block_until_ready(_l_mf_reference(x))
    np.testing.assert_allclose(np.asarray(out), np.asarray(ref),
                               rtol=1e-6, atol=1e-6)

    print("KERNEL_OK")
</pallas_src>

<mosaic_0001>
module attributes {stable_mosaic.version = 11 : i64} {
  func.func @_lmf_kernel(%arg0: i32, %arg1: memref<1x3x16x32xf32, #tpu.memory_space<vmem>>, %arg2: memref<1x1x16x32xf32, #tpu.memory_space<vmem>>) attributes {dimension_semantics = [#tpu.dimension_semantics<parallel>], iteration_bounds = array<i64: 1>, scalar_prefetch = 0 : i64, scratch_operands = 0 : i64, tpu.core_type = #tpu.core_type<tc>, window_params = [{transform_indices = @transform_0, window_bounds = array<i64: 1, 3, 16, 32>}, {transform_indices = @transform_1, window_bounds = array<i64: 1, 1, 16, 32>}]} {
    %cst = arith.constant 0.000000e+00 : f32
    %0 = vector.broadcast %cst : f32 to vector<1x32xf32>
    %cst_0 = arith.constant 0.000000e+00 : f32
    %1 = vector.broadcast %cst_0 : f32 to vector<16x1xf32>
    %2 = tpu.iota {dimensions = array<i32: 1>} : vector<16x32xi32>
    %c16_i32 = arith.constant 16 : i32
    %c0_i32 = arith.constant 0 : i32
    %3 = arith.cmpi eq, %c16_i32, %c0_i32 : i32
    %c1_i32 = arith.constant 1 : i32
    %4 = arith.select %3, %c1_i32, %c16_i32 : i32
    %5 = vector.broadcast %4 : i32 to vector<16x32xi32>
    %6 = arith.remsi %2, %5 : vector<16x32xi32>
    %c0_i32_1 = arith.constant 0 : i32
    %7 = vector.broadcast %c0_i32_1 : i32 to vector<16x32xi32>
    %8 = arith.cmpi ne, %6, %7 : vector<16x32xi32>
    %c0_i32_2 = arith.constant 0 : i32
    %9 = vector.broadcast %c0_i32_2 : i32 to vector<16x32xi32>
    %10 = arith.cmpi slt, %6, %9 : vector<16x32xi32>
    %c0_i32_3 = arith.constant 0 : i32
    %11 = arith.cmpi slt, %4, %c0_i32_3 : i32
    %12 = vector.broadcast %11 : i1 to vector<16x32xi1>
    %13 = vector.broadcast %12 : vector<16x32xi1> to vector<16x32xi1>
    %14 = arith.xori %10, %13 : vector<16x32xi1>
    %15 = arith.andi %14, %8 : vector<16x32xi1>
    %16 = vector.broadcast %4 : i32 to vector<16x32xi32>
    %17 = arith.addi %6, %16 : vector<16x32xi32>
    %18 = arith.select %15, %17, %6 : vector<16x32xi1>, vector<16x32xi32>
    %c0_i32_4 = arith.constant 0 : i32
    %19 = vector.broadcast %c0_i32_4 : i32 to vector<16x32xi32>
    %20 = arith.cmpi eq, %18, %19 : vector<16x32xi32>
    %c15_i32 = arith.constant 15 : i32
    %21 = vector.broadcast %c15_i32 : i32 to vector<16x32xi32>
    %22 = arith.cmpi eq, %18, %21 : vector<16x32xi32>
    %cst_5 = arith.constant 0.000000e+00 : f32
    %23 = vector.broadcast %cst_5 : f32 to vector<16x32xf32>
    %c0 = arith.constant 0 : index
    %c0_6 = arith.constant 0 : index
    %c0_7 = arith.constant 0 : index
    %c0_8 = arith.constant 0 : index
    %24 = vector.load %arg1[%c0, %c0_6, %c0_7, %c0_8] : memref<1x3x16x32xf32, #tpu.memory_space<vmem>>, vector<1x1x16x32xf32>
    %25 = vector.shape_cast %24 : vector<1x1x16x32xf32> to vector<16x32xf32>
    %26 = vector.extract_strided_slice %25 {offsets = [0, 0], sizes = [16, 31], strides = [1, 1]} : vector<16x32xf32> to vector<16x31xf32>
    %27 = tpu.concatenate %1, %26 in 1 : vector<16x1xf32>, vector<16x31xf32> -> vector<16x32xf32>
    %28 = vector.extract_strided_slice %25 {offsets = [0, 1], sizes = [16, 31], strides = [1, 1]} : vector<16x32xf32> to vector<16x31xf32>
    %29 = tpu.concatenate %28, %1 in 1 : vector<16x31xf32>, vector<16x1xf32> -> vector<16x32xf32>
    %cst_9 = arith.constant 0.000000e+00 : f32
    %30 = vector.broadcast %cst_9 : f32 to vector<16x32xf32>
    %31 = arith.select %20, %30, %27 : vector<16x32xi1>, vector<16x32xf32>
    %cst_10 = arith.constant 0.000000e+00 : f32
    %32 = vector.broadcast %cst_10 : f32 to vector<16x32xf32>
    %33 = arith.select %22, %32, %29 : vector<16x32xi1>, vector<16x32xf32>
    %34 = vector.extract_strided_slice %33 {offsets = [1, 0], sizes = [15, 32], strides = [1, 1]} : vector<16x32xf32> to vector<15x32xf32>
    %35 = tpu.concatenate %34, %0 in 0 : vector<15x32xf32>, vector<1x32xf32> -> vector<16x32xf32>
    %36 = vector.extract_strided_slice %31 {offsets = [0, 0], sizes = [15, 32], strides = [1, 1]} : vector<16x32xf32> to vector<15x32xf32>
    %37 = tpu.concatenate %0, %36 in 0 : vector<1x32xf32>, vector<15x32xf32> -> vector<16x32xf32>
    %38 = vector.extract_strided_slice %31 {offsets = [1, 0], sizes = [15, 32], strides = [1, 1]} : vector<16x32xf32> to vector<15x32xf32>
    %39 = tpu.concatenate %38, %0 in 0 : vector<15x32xf32>, vector<1x32xf32> -> vector<16x32xf32>
    %40 = vector.extract_strided_slice %25 {offsets = [0, 0], sizes = [15, 32], strides = [1, 1]} : vector<16x32xf32> to vector<15x32xf32>
    %41 = tpu.concatenate %0, %40 in 0 : vector<1x32xf32>, vector<15x32xf32> -> vector<16x32xf32>
    %42 = vector.extract_strided_slice %33 {offsets = [0, 0], sizes = [15, 32], strides = [1, 1]} : vector<16x32xf32> to vector<15x32xf32>
    %43 = tpu.concatenate %0, %42 in 0 : vector<1x32xf32>, vector<15x32xf32> -> vector<16x32xf32>
    %44 = arith.minimumf %31, %39 : vector<16x32xf32>
    %45 = arith.maximumf %31, %39 : vector<16x32xf32>
    %46 = arith.minimumf %25, %35 : vector<16x32xf32>
    %47 = arith.maximumf %25, %35 : vector<16x32xf32>
    %48 = arith.minimumf %33, %35 : vector<16x32xf32>
    %49 = arith.maximumf %33, %35 : vector<16x32xf32>
    %50 = arith.minimumf %37, %44 : vector<16x32xf32>
    %51 = arith.maximumf %37, %44 : vector<16x32xf32>
    %52 = arith.minimumf %41, %46 : vector<16x32xf32>
    %53 = arith.maximumf %41, %46 : vector<16x32xf32>
    %54 = arith.minimumf %43, %48 : vector<16x32xf32>
    %55 = arith.maximumf %43, %48 : vector<16x32xf32>
    %56 = arith.minimumf %51, %45 : vector<16x32xf32>
    %57 = arith.maximumf %51, %45 : vector<16x32xf32>
    %58 = arith.minimumf %53, %47 : vector<16x32xf32>
    %59 = arith.maximumf %53, %47 : vector<16x32xf32>
    %60 = arith.minimumf %55, %49 : vector<16x32xf32>
    %61 = arith.maximumf %55, %49 : vector<16x32xf32>
    %62 = arith.maximumf %50, %52 : vector<16x32xf32>
    %63 = arith.minimumf %59, %61 : vector<16x32xf32>
    %64 = arith.minimumf %58, %60 : vector<16x32xf32>
    %65 = arith.maximumf %58, %60 : vector<16x32xf32>
    %66 = arith.maximumf %62, %54 : vector<16x32xf32>
    %67 = arith.maximumf %56, %64 : vector<16x32xf32>
    %68 = arith.minimumf %57, %63 : vector<16x32xf32>
    %69 = arith.minimumf %67, %65 : vector<16x32xf32>
    %70 = arith.minimumf %69, %68 : vector<16x32xf32>
    %71 = arith.maximumf %69, %68 : vector<16x32xf32>
    %72 = arith.maximumf %66, %70 : vector<16x32xf32>
    %73 = arith.minimumf %72, %71 : vector<16x32xf32>
    %74 = arith.subf %73, %25 : vector<16x32xf32>
    %75 = arith.mulf %74, %74 : vector<16x32xf32>
    %76 = arith.addf %23, %75 : vector<16x32xf32>
    %c0_11 = arith.constant 0 : index
    %c1 = arith.constant 1 : index
    %c0_12 = arith.constant 0 : index
    %c0_13 = arith.constant 0 : index
    %77 = vector.load %arg1[%c0_11, %c1, %c0_12, %c0_13] : memref<1x3x16x32xf32, #tpu.memory_space<vmem>>, vector<1x1x16x32xf32>
    %78 = vector.shape_cast %77 : vector<1x1x16x32xf32> to vector<16x32xf32>
    %79 = vector.extract_strided_slice %78 {offsets = [0, 0], sizes = [16, 31], strides = [1, 1]} : vector<16x32xf32> to vector<16x31xf32>
    %80 = tpu.concatenate %1, %79 in 1 : vector<16x1xf32>, vector<16x31xf32> -> vector<16x32xf32>
    %81 = vector.extract_strided_slice %78 {offsets = [0, 1], sizes = [16, 31], strides = [1, 1]} : vector<16x32xf32> to vector<16x31xf32>
    %82 = tpu.concatenate %81, %1 in 1 : vector<16x31xf32>, vector<16x1xf32> -> vector<16x32xf32>
    %cst_14 = arith.constant 0.000000e+00 : f32
    %83 = vector.broadcast %cst_14 : f32 to vector<16x32xf32>
    %84 = arith.select %20, %83, %80 : vector<16x32xi1>, vector<16x32xf32>
    %cst_15 = arith.constant 0.000000e+00 : f32
    %85 = vector.broadcast %cst_15 : f32 to vector<16x32xf32>
    %86 = arith.select %22, %85, %82 : vector<16x32xi1>, vector<16x32xf32>
    %87 = vector.extract_strided_slice %86 {offsets = [1, 0], sizes = [15, 32], strides = [1, 1]} : vector<16x32xf32> to vector<15x32xf32>
    %88 = tpu.concatenate %87, %0 in 0 : vector<15x32xf32>, vector<1x32xf32> -> vector<16x32xf32>
    %89 = vector.extract_strided_slice %84 {offsets = [0, 0], sizes = [15, 32], strides = [1, 1]} : vector<16x32xf32> to vector<15x32xf32>
    %90 = tpu.concatenate %0, %89 in 0 : vector<1x32xf32>, vector<15x32xf32> -> vector<16x32xf32>
    %91 = vector.extract_strided_slice %84 {offsets = [1, 0], sizes = [15, 32], strides = [1, 1]} : vector<16x32xf32> to vector<15x32xf32>
    %92 = tpu.concatenate %91, %0 in 0 : vector<15x32xf32>, vector<1x32xf32> -> vector<16x32xf32>
    %93 = vector.extract_strided_slice %78 {offsets = [0, 0], sizes = [15, 32], strides = [1, 1]} : vector<16x32xf32> to vector<15x32xf32>
    %94 = tpu.concatenate %0, %93 in 0 : vector<1x32xf32>, vector<15x32xf32> -> vector<16x32xf32>
    %95 = vector.extract_strided_slice %86 {offsets = [0, 0], sizes = [15, 32], strides = [1, 1]} : vector<16x32xf32> to vector<15x32xf32>
    %96 = tpu.concatenate %0, %95 in 0 : vector<1x32xf32>, vector<15x32xf32> -> vector<16x32xf32>
    %97 = arith.minimumf %84, %92 : vector<16x32xf32>
    %98 = arith.maximumf %84, %92 : vector<16x32xf32>
    %99 = arith.minimumf %78, %88 : vector<16x32xf32>
    %100 = arith.maximumf %78, %88 : vector<16x32xf32>
    %101 = arith.minimumf %86, %88 : vector<16x32xf32>
    %102 = arith.maximumf %86, %88 : vector<16x32xf32>
    %103 = arith.minimumf %90, %97 : vector<16x32xf32>
    %104 = arith.maximumf %90, %97 : vector<16x32xf32>
    %105 = arith.minimumf %94, %99 : vector<16x32xf32>
    %106 = arith.maximumf %94, %99 : vector<16x32xf32>
    %107 = arith.minimumf %96, %101 : vector<16x32xf32>
    %108 = arith.maximumf %96, %101 : vector<16x32xf32>
    %109 = arith.minimumf %104, %98 : vector<16x32xf32>
    %110 = arith.maximumf %104, %98 : vector<16x32xf32>
    %111 = arith.minimumf %106, %100 : vector<16x32xf32>
    %112 = arith.maximumf %106, %100 : vector<16x32xf32>
    %113 = arith.minimumf %108, %102 : vector<16x32xf32>
    %114 = arith.maximumf %108, %102 : vector<16x32xf32>
    %115 = arith.maximumf %103, %105 : vector<16x32xf32>
    %116 = arith.minimumf %112, %114 : vector<16x32xf32>
    %117 = arith.minimumf %111, %113 : vector<16x32xf32>
    %118 = arith.maximumf %111, %113 : vector<16x32xf32>
    %119 = arith.maximumf %115, %107 : vector<16x32xf32>
    %120 = arith.maximumf %109, %117 : vector<16x32xf32>
    %121 = arith.minimumf %110, %116 : vector<16x32xf32>
    %122 = arith.minimumf %120, %118 : vector<16x32xf32>
    %123 = arith.minimumf %122, %121 : vector<16x32xf32>
    %124 = arith.maximumf %122, %121 : vector<16x32xf32>
    %125 = arith.maximumf %119, %123 : vector<16x32xf32>
    %126 = arith.minimumf %125, %124 : vector<16x32xf32>
    %127 = arith.subf %126, %78 : vector<16x32xf32>
    %128 = arith.mulf %127, %127 : vector<16x32xf32>
    %129 = arith.addf %76, %128 : vector<16x32xf32>
    %c0_16 = arith.constant 0 : index
    %c2 = arith.constant 2 : index
    %c0_17 = arith.constant 0 : index
    %c0_18 = arith.constant 0 : index
    %130 = vector.load %arg1[%c0_16, %c2, %c0_17, %c0_18] : memref<1x3x16x32xf32, #tpu.memory_space<vmem>>, vector<1x1x16x32xf32>
    %131 = vector.shape_cast %130 : vector<1x1x16x32xf32> to vector<16x32xf32>
    %132 = vector.extract_strided_slice %131 {offsets = [0, 0], sizes = [16, 31], strides = [1, 1]} : vector<16x32xf32> to vector<16x31xf32>
    %133 = tpu.concatenate %1, %132 in 1 : vector<16x1xf32>, vector<16x31xf32> -> vector<16x32xf32>
    %134 = vector.extract_strided_slice %131 {offsets = [0, 1], sizes = [16, 31], strides = [1, 1]} : vector<16x32xf32> to vector<16x31xf32>
    %135 = tpu.concatenate %134, %1 in 1 : vector<16x31xf32>, vector<16x1xf32> -> vector<16x32xf32>
    %cst_19 = arith.constant 0.000000e+00 : f32
    %136 = vector.broadcast %cst_19 : f32 to vector<16x32xf32>
    %137 = arith.select %20, %136, %133 : vector<16x32xi1>, vector<16x32xf32>
    %cst_20 = arith.constant 0.000000e+00 : f32
    %138 = vector.broadcast %cst_20 : f32 to vector<16x32xf32>
    %139 = arith.select %22, %138, %135 : vector<16x32xi1>, vector<16x32xf32>
    %140 = vector.extract_strided_slice %139 {offsets = [1, 0], sizes = [15, 32], strides = [1, 1]} : vector<16x32xf32> to vector<15x32xf32>
    %141 = tpu.concatenate %140, %0 in 0 : vector<15x32xf32>, vector<1x32xf32> -> vector<16x32xf32>
    %142 = vector.extract_strided_slice %137 {offsets = [0, 0], sizes = [15, 32], strides = [1, 1]} : vector<16x32xf32> to vector<15x32xf32>
    %143 = tpu.concatenate %0, %142 in 0 : vector<1x32xf32>, vector<15x32xf32> -> vector<16x32xf32>
    %144 = vector.extract_strided_slice %137 {offsets = [1, 0], sizes = [15, 32], strides = [1, 1]} : vector<16x32xf32> to vector<15x32xf32>
    %145 = tpu.concatenate %144, %0 in 0 : vector<15x32xf32>, vector<1x32xf32> -> vector<16x32xf32>
    %146 = vector.extract_strided_slice %131 {offsets = [0, 0], sizes = [15, 32], strides = [1, 1]} : vector<16x32xf32> to vector<15x32xf32>
    %147 = tpu.concatenate %0, %146 in 0 : vector<1x32xf32>, vector<15x32xf32> -> vector<16x32xf32>
    %148 = vector.extract_strided_slice %139 {offsets = [0, 0], sizes = [15, 32], strides = [1, 1]} : vector<16x32xf32> to vector<15x32xf32>
    %149 = tpu.concatenate %0, %148 in 0 : vector<1x32xf32>, vector<15x32xf32> -> vector<16x32xf32>
    %150 = arith.minimumf %137, %145 : vector<16x32xf32>
    %151 = arith.maximumf %137, %145 : vector<16x32xf32>
    %152 = arith.minimumf %131, %141 : vector<16x32xf32>
    %153 = arith.maximumf %131, %141 : vector<16x32xf32>
    %154 = arith.minimumf %139, %141 : vector<16x32xf32>
    %155 = arith.maximumf %139, %141 : vector<16x32xf32>
    %156 = arith.minimumf %143, %150 : vector<16x32xf32>
    %157 = arith.maximumf %143, %150 : vector<16x32xf32>
    %158 = arith.minimumf %147, %152 : vector<16x32xf32>
    %159 = arith.maximumf %147, %152 : vector<16x32xf32>
    %160 = arith.minimumf %149, %154 : vector<16x32xf32>
    %161 = arith.maximumf %149, %154 : vector<16x32xf32>
    %162 = arith.minimumf %157, %151 : vector<16x32xf32>
    %163 = arith.maximumf %157, %151 : vector<16x32xf32>
    %164 = arith.minimumf %159, %153 : vector<16x32xf32>
    %165 = arith.maximumf %159, %153 : vector<16x32xf32>
    %166 = arith.minimumf %161, %155 : vector<16x32xf32>
    %167 = arith.maximumf %161, %155 : vector<16x32xf32>
    %168 = arith.maximumf %156, %158 : vector<16x32xf32>
    %169 = arith.minimumf %165, %167 : vector<16x32xf32>
    %170 = arith.minimumf %164, %166 : vector<16x32xf32>
    %171 = arith.maximumf %164, %166 : vector<16x32xf32>
    %172 = arith.maximumf %168, %160 : vector<16x32xf32>
    %173 = arith.maximumf %162, %170 : vector<16x32xf32>
    %174 = arith.minimumf %163, %169 : vector<16x32xf32>
    %175 = arith.minimumf %173, %171 : vector<16x32xf32>
    %176 = arith.minimumf %175, %174 : vector<16x32xf32>
    %177 = arith.maximumf %175, %174 : vector<16x32xf32>
    %178 = arith.maximumf %172, %176 : vector<16x32xf32>
    %179 = arith.minimumf %178, %177 : vector<16x32xf32>
    %180 = arith.subf %179, %131 : vector<16x32xf32>
    %181 = arith.mulf %180, %180 : vector<16x32xf32>
    %182 = arith.addf %129, %181 : vector<16x32xf32>
    %c0_21 = arith.constant 0 : index
    %c0_22 = arith.constant 0 : index
    %c0_23 = arith.constant 0 : index
    %c0_24 = arith.constant 0 : index
    %183 = vector.load %arg2[%c0_21, %c0_22, %c0_23, %c0_24] : memref<1x1x16x32xf32, #tpu.memory_space<vmem>>, vector<1x1x16x32xf32>
    %184 = vector.shape_cast %183 : vector<1x1x16x32xf32> to vector<16x32xf32>
    %185 = vector.shape_cast %182 : vector<16x32xf32> to vector<1x1x16x32xf32>
    tpu.vector_store %arg2[%c0_21, %c0_22, %c0_23, %c0_24], %185 {strides = array<i32>} : memref<1x1x16x32xf32, #tpu.memory_space<vmem>>, vector<1x1x16x32xf32>,
    return
  }
  func.func @transform_0(%arg0: i32) -> (i32, i32, i32, i32) {
    %c0_i32 = arith.constant 0 : i32
    %c0_i32_0 = arith.constant 0 : i32
    %c0_i32_1 = arith.constant 0 : i32
    %c0_i32_2 = arith.constant 0 : i32
    return %arg0, %c0_i32, %c0_i32_0, %c0_i32_1 : i32, i32, i32, i32
  }
  func.func @transform_1(%arg0: i32) -> (i32, i32, i32, i32) {
    %c0_i32 = arith.constant 0 : i32
    %c0_i32_0 = arith.constant 0 : i32
    %c0_i32_1 = arith.constant 0 : i32
    %c0_i32_2 = arith.constant 0 : i32
    return %arg0, %c0_i32, %c0_i32_0, %c0_i32_1 : i32, i32, i32, i32
  }
}

</mosaic_0001>

<bundles_post_ra>
// kernel: l_mf.1
= control target key start
LH: loop header
LB: loop body
LE: loop exit
PB: predicated region body
PF: predicated region fallthrough
CT: control target
= control target key end

     0   :  { %s415_s10 = smov 127   ;;  %s416_s15 = smov 1   ;;  %v8_v6 = vlaneseq  ;;  %vm43_vm0 = vcmask 252928   ;;  %vm52_vm2 = vcmask 1046528   ;;  %vm61_vm3 = vcmask 1040384   ;;  %s735_s0 = inlined_call_operand.vmem [shape: f32[1,3,16,32], index: 0, kind: input, shape index: {}]   ;;  %s736_s1 = inlined_call_operand.vmem [shape: f32[1,1,16,32], index: 1, kind: output, shape index: {}]  }
   0x1   :  { %v430_v0 = vld [vmem:[%s735_s0 + $0x10] sm:$0xff]  ;;  %v435_v1 = vld [vmem:[%s735_s0] sm:$0xff]  ;;  %v442_v2 = vld [vmem:[%s735_s0 + $0x18] sm:$0xff]  ;;  %vm34_vm4 = vcmask 7168   ;;  %vm402_vm6 = vcmask 261120  }
   0x2   :  { %739 = vst [vmem:[#allocation2_spill] sm:$0xff] %v435_v1  ;;  %165 = vrot.lane.b32.xlu1 %v430_v0, %s415_s10  ;;  %37 = vrot.lane.b32.xlu0 %v435_v1, %s415_s10  ;;  %v447_v3 = vld [vmem:[%s735_s0 + $0x8] sm:$0xff]  ;;  %v463_v5 = vld [vmem:[%s735_s0 + $0x20] sm:$0xff]  ;;  %v9_v7 = vand.u32 127, %v8_v6  ;;  %v199_v19 = vrot.slane %v430_v0, 7  ;;  %v74_v20 = vrot.slane %v435_v1, 7 }
   0x3   :  { %740 = vst [vmem:[#allocation3_spill] sm:$0xff] %v447_v3  ;;  %v458_v4 = vld [vmem:[%s735_s0 + $0x28] sm:$0xff]  ;;  %v200_v21 = vrot.slane %v442_v2, 7  ;;  %v75_v23 = vrot.slane %v447_v3, 7  ;;  %v324_v28 = vrot.slane %v463_v5, 7 }
   0x4   :  { %v14_v10 = vand.u32 15, %v9_v7  ;;  %v325_v27 = vrot.slane %v458_v4, 7  ;;  %v506_v39 = vsel %vm61_vm3, 0.0, %v74_v20  ;;  %v509_v40 = vsel %vm61_vm3, 0.0, %v199_v19 }
   0x5   :  { %v496_v35 = vsel %vm61_vm3, %v199_v19, %v200_v21  ;;  %v499_v37 = vsel %vm61_vm3, %v74_v20, %v75_v23  ;;  %v522_v45 = vsel %vm61_vm3, 0.0, %v324_v28 }
   0x6   :  { %167 = vrot.lane.b32.xlu1 %v442_v2, %s415_s10  ;;  %39 = vrot.lane.b32.xlu0 %v447_v3, %s415_s10  ;;  %vm469_vm1 = vcmp.eq.s32.totalorder %v14_v10, 15  ;;  %vm501_vm5 = vcmp.eq.s32.totalorder %v14_v10, 0  ;;  %v512_v41 = vsel %vm61_vm3, %v324_v28, %v325_v27 }
   0xa   :  { %30 = vrot.lane.b32.xlu1 %v447_v3, %s416_s15  ;;  %28 = vrot.lane.b32.xlu0 %v435_v1, %s416_s15 }
   0xe   :  { %159 = vrot.lane.b32.xlu1 %v442_v2, %s416_s15  ;;  %157 = vrot.lane.b32.xlu0 %v430_v0, %s416_s15 }
  0x12   :  { %292 = vrot.lane.b32.xlu1 %v458_v4, %s415_s10  ;;  %290 = vrot.lane.b32.xlu0 %v463_v5, %s415_s10 }
  0x16   :  { %284 = vrot.lane.b32.xlu1 %v458_v4, %s416_s15  ;;  %282 = vrot.lane.b32.xlu0 %v463_v5, %s416_s15 }
  0x74   :  { %v166_v8 = vpop.permute.xlu1 %165  ;;  %v38_v9 = vpop.permute.xlu0 %37 }
  0x75   :  { %v171_v16 = vsel %vm43_vm0, %v166_v8, 0.0  ;;  %v44_v17 = vsel %vm43_vm0, %v38_v9, 0.0 }
  0x76   :  { %v175_v24 = vsel %vm469_vm1, 0.0, %v171_v16  ;;  %v487_v25 = vsel %vm469_vm1, 0.0, %v44_v17 }
  0x77   :  { %v205_v29 = vrot.slane %v175_v24, 7  ;;  %v80_v30 = vrot.slane %v487_v25, 7  ;;  %v179_v34 = vrot.slane %v175_v24, 1  ;;  %v53_v42 = vrot.slane %v487_v25, 1 }
  0x78   :  { %v168_v11 = vpop.permute.xlu1 %167  ;;  %v40_v12 = vpop.permute.xlu0 %39 }
  0x79   :  { %v172_v14 = vsel %vm43_vm0, %v168_v11, 0.0  ;;  %v45_v18 = vsel %vm43_vm0, %v40_v12, 0.0  ;;  %v525_v46 = vsel %vm61_vm3, 0.0, %v205_v29  ;;  %v528_v47 = vsel %vm61_vm3, 0.0, %v80_v30 }
  0x7a   :  { %v176_v15 = vsel %vm469_vm1, 0.0, %v172_v14  ;;  %v49_v26 = vsel %vm469_vm1, 0.0, %v45_v18 }
  0x7b   :  { %v180_v22 = vrot.slane %v176_v15, 1  ;;  %v54_v32 = vrot.slane %v49_v26, 1  ;;  %v206_v36 = vrot.slane %v176_v15, 7  ;;  %v81_v53 = vrot.slane %v49_v26, 7 }
  0x7c   :  { %v31_v33 = vpop.permute.xlu1 %30  ;;  %v29_v54 = vpop.permute.xlu0 %28 }
  0x7d   :  { %v184_v31 = vsel %vm52_vm2, %v180_v22, 0.0  ;;  %v516_v43 = vsel %vm52_vm2, %v179_v34, %v180_v22  ;;  %v58_v48 = vsel %vm52_vm2, %v54_v32, 0.0  ;;  %v36_v49 = vsel %vm34_vm4, 0.0, %v31_v33 }
  0x7e   :  { %v519_v44 = vmin.f32 %v442_v2, %v184_v31  ;;  %v533_v50 = vsel %vm61_vm3, %v205_v29, %v206_v36  ;;  %v535_v51 = vmin.f32 %v176_v15, %v184_v31  ;;  %v55_v52 = vsel %vm52_vm2, %v53_v42, %v54_v32 }
  0x7f   :  { %v540_v55 = vmax.f32 %v430_v0, %v516_v43  ;;  %v218_v56 = vmax.f32 %v442_v2, %v184_v31  ;;  %v544_v57 = vmin.f32 %v175_v24, %v516_v43  ;;  %v47_v58 = vsel %vm501_vm5, 0.0, %v36_v49 }
  0x80   :  { %v160_v59 = vpop.permute.xlu1 %159  ;;  %v549_v60 = vmax.f32 %v175_v24, %v516_v43  ;;  %v230_v61 = vmax.f32 %v496_v35, %v519_v44  ;;  %v554_v62 = vmin.f32 %v447_v3, %v58_v48  ;;  %v556_v63 = vmin.f32 %v49_v26, %v58_v48 }
  0x81   :  { %v222_v6 = vmax.f32 %v176_v15, %v184_v31  ;;  %v69_v8 = vrot.slane %v47_v58, 1  ;;  %v35_v9 = vsel %vm34_vm4, 0.0, %v29_v54  ;;  %v564_v11 = vsel %vm61_vm3, %v80_v30, %v81_v53 }
  0x82   :  { %v46_v12 = vsel %vm501_vm5, 0.0, %v35_v9  ;;  %v164_v14 = vsel %vm34_vm4, 0.0, %v160_v59  ;;  %v234_v15 = vmax.f32 %v533_v50, %v535_v51  ;;  %v572_v16 = vmax.f32 %v435_v1, %v55_v52 }
  0x83   :  { %v73_v17 = vsel %vm52_vm2, %v69_v8, 0.0  ;;  %v68_v18 = vrot.slane %v46_v12, 1  ;;  %v575_v19 = vmin.f32 %v230_v61, %v218_v56  ;;  %v93_v20 = vmax.f32 %v447_v3, %v58_v48 }
  0x84   :  { %v105_v21 = vmax.f32 %v499_v37, %v554_v62  ;;  %v109_v22 = vmax.f32 %v564_v11, %v556_v63  ;;  %v583_v23 = vmin.f32 %v487_v25, %v55_v52  ;;  %v63_v24 = vrot.slane %v47_v58, 7 }
  0x85   :  { %v62_v27 = vrot.slane %v46_v12, 7  ;;  %v174_v28 = vsel %vm501_vm5, 0.0, %v164_v14  ;;  %v97_v29 = vmax.f32 %v49_v26, %v58_v48  ;;  %v87_v30 = vmin.f32 %v47_v58, %v73_v17 }
  0x86   :  { %v90_v31 = vmin.f32 %v435_v1, %v55_v52  ;;  %v70_v32 = vsel %vm52_vm2, %v68_v18, %v69_v8  ;;  %v242_v33 = vmax.f32 %v230_v61, %v218_v56  ;;  %v589_v34 = vmin.f32 %v234_v15, %v222_v6  ;;  %v293_v18 = vpop.permute.xlu1 %292 }
  0x87   :  { %v246_v36 = vmax.f32 %v234_v15, %v222_v6  ;;  %v592_v42 = vmax.f32 %v487_v25, %v55_v52  ;;  %v115_v49 = vmin.f32 %v105_v21, %v93_v20  ;;  %v117_v53 = vmax.f32 %v105_v21, %v93_v20  ;;  %v158_v52 = vpop.permute.xlu0 %157 }
  0x88   :  { %v121_v54 = vmax.f32 %v109_v22, %v97_v29  ;;  %v194_v59 = vrot.slane %v174_v28, 1  ;;  %v119_v9 = vmin.f32 %v109_v22, %v97_v29  ;;  %v108_v26 = vmax.f32 %v528_v47, %v583_v23 }
  0x89   :  { %v64_v48 = vsel %vm61_vm3, %v62_v27, %v63_v24  ;;  %v86_v14 = vmin.f32 %v46_v12, %v70_v32  ;;  %v103_v56 = vmin.f32 %v499_v37, %v554_v62  ;;  %v107_v61 = vmin.f32 %v564_v11, %v556_v63 }
  0x8a   :  { %v101_v6 = vmax.f32 %v64_v48, %v87_v30  ;;  %v104_v25 = vmax.f32 %v506_v39, %v90_v31  ;;  %v602_v8 = vmin.f32 %v242_v33, %v246_v36  ;;  %v106_v20 = vmin.f32 %v528_v47, %v583_v23 }
  0x8b   :  { %v125_v21 = vmin.f32 %v117_v53, %v121_v54  ;;  %v89_v37 = vmax.f32 %v47_v58, %v73_v17  ;;  %v67_v62 = vsel %vm61_vm3, 0.0, %v62_v27  ;;  %v198_v63 = vsel %vm52_vm2, %v194_v59, 0.0 }
  0x8c   :  { %v127_v11 = vmin.f32 %v115_v49, %v119_v9  ;;  %v118_v22 = vmin.f32 %v108_v26, %v592_v42  ;;  %v100_v24 = vmax.f32 %v67_v62, %v86_v14  ;;  %v163_v29 = vsel %vm34_vm4, 0.0, %v158_v52 }
  0x8d   :  { %v111_v33 = vmin.f32 %v101_v6, %v89_v37  ;;  %v114_v36 = vmin.f32 %v104_v25, %v572_v16  ;;  %v188_v10 = vrot.slane %v174_v28, 7  ;;  %v173_v7 = vsel %vm501_vm5, 0.0, %v163_v29 }
  0x8e   :  { %v129_v47 = vmax.f32 %v115_v49, %v119_v9  ;;  %v88_v23 = vmax.f32 %v46_v12, %v70_v32  ;;  %v99_v58 = vmin.f32 %v64_v48, %v87_v30  ;;  %v617_v17 = vmin.f32 %v174_v28, %v198_v63 }
  0x8f   :  { %v120_v27 = vmax.f32 %v108_v26, %v592_v42  ;;  %v102_v53 = vmin.f32 %v506_v39, %v90_v31  ;;  %v623_v54 = vmin.f32 %v430_v0, %v516_v43  ;;  %v187_v52 = vrot.slane %v173_v7, 7 }
  0x90   :  { %v98_v15 = vmin.f32 %v67_v62, %v86_v14  ;;  %v110_v1 = vmin.f32 %v100_v24, %v88_v23  ;;  %v116_v3 = vmax.f32 %v104_v25, %v572_v16  ;;  %v193_v29 = vrot.slane %v173_v7, 1 }
  0x91   :  { %v113_v49 = vmax.f32 %v101_v6, %v89_v37  ;;  %v126_v12 = vmin.f32 %v114_v36, %v118_v22  ;;  %v133_v30 = vmax.f32 %v111_v33, %v127_v11  ;;  %v189_v32 = vsel %vm61_vm3, %v187_v52, %v188_v10  ;;  %v291_v33 = vpop.permute.xlu0 %290 }
  0x92   :  { %v123_v9 = vmax.f32 %v99_v58, %v103_v56  ;;  %v195_v42 = vsel %vm52_vm2, %v193_v29, %v194_v59  ;;  %v226_v39 = vmax.f32 %v189_v32, %v617_v17  ;;  %v297_v43 = vsel %vm43_vm0, %v293_v18, 0.0 }
  0x93   :  { %v214_v31 = vmax.f32 %v174_v28, %v198_v63  ;;  %v229_v26 = vmax.f32 %v509_v40, %v623_v54  ;;  %v233_v16 = vmax.f32 %v525_v46, %v544_v57  ;;  %v211_v48 = vmin.f32 %v173_v7, %v195_v42 }
  0x94   :  { %v112_v14 = vmax.f32 %v100_v24, %v88_v23  ;;  %v122_v6 = vmax.f32 %v98_v15, %v102_v53  ;;  %v132_v25 = vmax.f32 %v110_v1, %v126_v12  ;;  %v192_v10 = vsel %vm61_vm3, 0.0, %v187_v52 }
  0x95   :  { %v137_v56 = vmin.f32 %v133_v30, %v129_v47  ;;  %v225_v37 = vmax.f32 %v192_v10, %v211_v48  ;;  %v236_v59 = vmin.f32 %v226_v39, %v214_v31  ;;  %v637_v62 = vsel %vm469_vm1, 0.0, %v297_v43 }
  0x96   :  { %v124_v28 = vmin.f32 %v116_v3, %v120_v27  ;;  %v128_v18 = vmax.f32 %v114_v36, %v118_v22  ;;  %v131_v63 = vmax.f32 %v123_v9, %v107_v61  ;;  %v231_v11 = vmin.f32 %v525_v46, %v544_v57 }
  0x97   :  { %v135_v58 = vmin.f32 %v113_v49, %v125_v21  ;;  %v239_v15 = vmin.f32 %v229_v26, %v540_v55  ;;  %v243_v1 = vmin.f32 %v233_v16, %v549_v60  ;;  %v213_v24 = vmax.f32 %v173_v7, %v195_v42  ;;  %v285_v21 = vpop.permute.xlu1 %284 }
  0x98   :  { %v130_v47 = vmax.f32 %v122_v6, %v106_v20  ;;  %v643_v23 = vmin.f32 %v112_v14, %v124_v28  ;;  %v645_v53 = vmin.f32 %v132_v25, %v128_v18  ;;  %v305_v52 = vrot.slane %v637_v62, 1 }
  0x99   :  { %v139_v3 = vmin.f32 %v137_v56, %v135_v58  ;;  %v235_v22 = vmin.f32 %v225_v37, %v213_v24  ;;  %v745_v61 = vmin.f32 %v575_v19, %v589_v34  ;;  %v296_v57 = vsel %vm43_vm0, %v291_v33, 0.0 }
  0x9a   :  { %v141_v36 = vmax.f32 %v137_v56, %v135_v58  ;;  %v227_v7 = vmin.f32 %v509_v40, %v623_v54  ;;  %v241_v20 = vmax.f32 %v229_v26, %v540_v55  ;;  %v224_v27 = vmin.f32 %v189_v32, %v617_v17 }
  0x9b   :  { %v258_v46 = vmax.f32 %v236_v59, %v745_v61  ;;  %v245_v29 = vmax.f32 %v233_v16, %v549_v60  ;;  %v251_v49 = vmin.f32 %v239_v15, %v243_v1  ;;  %v223_v12 = vmin.f32 %v192_v10, %v211_v48  ;;  %v283_v10 = vpop.permute.xlu0 %282 }
  0x9c   :  { %v238_v30 = vmax.f32 %v226_v39, %v214_v31  ;;  %v138_v9 = vmin.f32 %v645_v53, %v643_v23  ;;  %v309_v42 = vsel %vm52_vm2, %v305_v52, 0.0  ;;  %v300_v43 = vsel %vm469_vm1, 0.0, %v296_v57 }
  0x9d   :  { %v289_v14 = vsel %vm34_vm4, 0.0, %v285_v21  ;;  %v140_v40 = vmax.f32 %v645_v53, %v643_v23  ;;  %v143_v55 = vmax.f32 %v131_v63, %v139_v3  ;;  %v257_v17 = vmax.f32 %v235_v22, %v251_v49 }
  0x9e   :  { %v746_v60 = vmax.f32 %v575_v19, %v589_v34  ;;  %v253_v32 = vmax.f32 %v239_v15, %v243_v1  ;;  %v747_v39 = vmin.f32 %v496_v35, %v519_v44  ;;  %v304_v26 = vrot.slane %v300_v43, 1 }
  0x9f   :  { %v299_v13 = vsel %vm501_vm5, 0.0, %v289_v14  ;;  %v237_v16 = vmax.f32 %v225_v37, %v213_v24  ;;  %v247_v48 = vmax.f32 %v223_v12, %v227_v7  ;;  %v260_v6 = vmin.f32 %v238_v30, %v602_v8 }
  0xa0   :  { %v262_v54 = vmin.f32 %v258_v46, %v746_v60  ;;  %v248_v31 = vmax.f32 %v224_v27, %v747_v39  ;;  %v675_v25 = vmin.f32 %v458_v4, %v309_v42  ;;  %v249_v56 = vmin.f32 %v241_v20, %v245_v29 }
  0xa1   :  { %v331_v19 = vrot.slane %v637_v62, 7  ;;  %v330_v34 = vrot.slane %v300_v43, 7  ;;  %v319_v59 = vrot.slane %v299_v13, 1  ;;  %v678_v28 = vmin.f32 %v257_v17, %v253_v32 }
  0xa2   :  { %v264_v35 = vmin.f32 %v262_v54, %v260_v6  ;;  %v681_v44 = vmin.f32 %v637_v62, %v309_v42  ;;  %v306_v37 = vsel %vm52_vm2, %v304_v26, %v305_v52  ;;  %v684_v18 = vmax.f32 %v130_v47, %v138_v9 }
  0xa3   :  { %v686_v8 = vmin.f32 %v143_v55, %v141_v36  ;;  %v748_v63 = vmin.f32 %v533_v50, %v535_v51  ;;  %v288_v58 = vsel %vm34_vm4, 0.0, %v283_v10  ;;  %v255_v15 = vmax.f32 %v247_v48, %v231_v11 }
  0xa4   :  { %v259_v1 = vmin.f32 %v237_v16, %v249_v56  ;;  %v343_v24 = vmax.f32 %v458_v4, %v309_v42  ;;  %v355_v3 = vmax.f32 %v512_v41, %v675_v25  ;;  %v332_v22 = vsel %vm61_vm3, %v330_v34, %v331_v19 }
  0xa5   :  { %v256_v33 = vmax.f32 %v248_v31, %v748_v63  ;;  %v340_v47 = vmin.f32 %v463_v5, %v306_v37  ;;  %v697_v52 = vmin.f32 %v300_v43, %v306_v37  ;;  %v323_v61 = vsel %vm52_vm2, %v319_v59, 0.0 }
  0xa6   :  { %v263_v50 = vmin.f32 %v678_v28, %v259_v1  ;;  %v359_v46 = vmax.f32 %v332_v22, %v681_v44  ;;  %v298_v11 = vsel %vm501_vm5, 0.0, %v288_v58  ;;  %v266_v57 = vmax.f32 %v262_v54, %v260_v6 }
  0xa7   :  { %v268_v51 = vmax.f32 %v256_v33, %v264_v35  ;;  %v347_v21 = vmax.f32 %v637_v62, %v309_v42  ;;  %v353_v36 = vmin.f32 %v512_v41, %v675_v25  ;;  %v313_v7 = vrot.slane %v299_v13, 7 }
  0xa8   :  { %v265_v20 = vmax.f32 %v678_v28, %v259_v1  ;;  %v365_v27 = vmin.f32 %v355_v3, %v343_v24  ;;  %v335_v29 = vsel %vm61_vm3, 0.0, %v330_v34  ;;  %v337_v49 = vmin.f32 %v299_v13, %v323_v61 }
  0xa9   :  { %v367_v12 = vmax.f32 %v355_v3, %v343_v24  ;;  %v354_v30 = vmax.f32 %v522_v45, %v340_v47  ;;  %v358_v9 = vmax.f32 %v335_v29, %v697_v52  ;;  %v312_v38 = vrot.slane %v298_v11, 7 }
  0xaa   :  { %v267_v14 = vmax.f32 %v255_v15, %v263_v50  ;;  %v270_v55 = vmin.f32 %v268_v51, %v266_v57  ;;  %v369_v17 = vmin.f32 %v359_v46, %v347_v21  ;;  %v318_v62 = vrot.slane %v298_v11, 1 }
  0xab   :  { %v342_v42 = vmax.f32 %v463_v5, %v306_v37  ;;  %v346_v41 = vmax.f32 %v300_v43, %v306_v37  ;;  %v371_v60 = vmax.f32 %v359_v46, %v347_v21  ;;  %v314_v54 = vsel %vm61_vm3, %v312_v38, %v313_v7 }
  0xac   :  { %v339_v32 = vmax.f32 %v299_v13, %v323_v61  ;;  %v320_v39 = vsel %vm52_vm2, %v318_v62, %v319_v59  ;;  %v349_v31 = vmin.f32 %v314_v54, %v337_v49  ;;  %v351_v26 = vmax.f32 %v314_v54, %v337_v49 }
  0xad   :  { %v364_v16 = vmin.f32 %v354_v30, %v342_v42  ;;  %v366_v48 = vmax.f32 %v354_v30, %v342_v42  ;;  %v368_v6 = vmin.f32 %v358_v9, %v346_v41  ;;  %v336_v25 = vmin.f32 %v298_v11, %v320_v39 }
  0xae   :  { %v377_v10 = vmin.f32 %v365_v27, %v369_v17  ;;  %v317_v56 = vsel %vm61_vm3, 0.0, %v312_v38  ;;  %v361_v19 = vmin.f32 %v351_v26, %v339_v32  ;;  %v363_v34 = vmax.f32 %v351_v26, %v339_v32 }
  0xaf   :  { %v370_v28 = vmax.f32 %v358_v9, %v346_v41  ;;  %v338_v35 = vmax.f32 %v298_v11, %v320_v39  ;;  %v348_v43 = vmin.f32 %v317_v56, %v336_v25  ;;  %v350_v37 = vmax.f32 %v317_v56, %v336_v25 }
  0xb0   :  { %v375_v63 = vmin.f32 %v367_v12, %v371_v60  ;;  %v379_v33 = vmax.f32 %v365_v27, %v369_v17  ;;  %v373_v13 = vmax.f32 %v349_v31, %v353_v36  ;;  %v383_v58 = vmax.f32 %v361_v19, %v377_v10  ;;  %v750_v17 = vld [vmem:[#allocation2_spill] sm:$0xff] }
  0xb1   :  { %v376_v59 = vmin.f32 %v364_v16, %v368_v6  ;;  %v352_v15 = vmin.f32 %v522_v45, %v340_v47  ;;  %v360_v1 = vmin.f32 %v350_v37, %v338_v35  ;;  %v362_v24 = vmax.f32 %v350_v37, %v338_v35 }
  0xb2   :  { %v269_v3 = vmin.f32 %v267_v14, %v265_v20  ;;  %v357_v61 = vmin.f32 %v332_v22, %v681_v44  ;;  %v385_v50 = vmin.f32 %v363_v34, %v375_v63  ;;  %v387_v51 = vmin.f32 %v383_v58, %v379_v33  ;;  %v749_v44 = vld [vmem:[#allocation3_spill] sm:$0xff] }
  0xb3   :  { %v374_v46 = vmin.f32 %v366_v48, %v370_v28  ;;  %v378_v57 = vmax.f32 %v364_v16, %v368_v6  ;;  %v372_v21 = vmax.f32 %v348_v43, %v352_v15  ;;  %v382_v11 = vmax.f32 %v360_v1, %v376_v59 }
  0xb4   :  { %v272_v7 = vsub.f32 %v270_v55, %v442_v2  ;;  %v381_v49 = vmax.f32 %v373_v13, %v357_v61  ;;  %v389_v27 = vmin.f32 %v387_v51, %v385_v50  ;;  %v144_v45 = vmin.f32 %v684_v18, %v140_v40 }
  0xb5   :  { %v356_v47 = vmin.f32 %v335_v29, %v697_v52  ;;  %v384_v36 = vmin.f32 %v362_v24, %v374_v46  ;;  %v386_v20 = vmin.f32 %v382_v11, %v378_v57  ;;  %v147_v22 = vsub.f32 %v686_v8, %v749_v44 }
  0xb6   :  { %v391_v12 = vmax.f32 %v387_v51, %v385_v50  ;;  %v393_v30 = vmax.f32 %v381_v49, %v389_v27  ;;  %v271_v9 = vsub.f32 %v269_v3, %v430_v0  ;;  %v274_v14 = vmul.f32 %v272_v7, %v272_v7 }
  0xb7   :  { %v380_v38 = vmax.f32 %v372_v21, %v356_v47  ;;  %v388_v2 = vmin.f32 %v386_v20, %v384_v36  ;;  %v146_v62 = vsub.f32 %v144_v45, %v750_v17  ;;  %v390_v23 = vmax.f32 %v386_v20, %v384_v36 }
  0xb8   :  { %v395_v55 = vmin.f32 %v393_v30, %v391_v12  ;;  %v149_v40 = vmul.f32 %v147_v22, %v147_v22  ;;  %v273_v52 = vmul.f32 %v271_v9, %v271_v9 }
  0xb9   :  { %v392_v53 = vmax.f32 %v380_v38, %v388_v2  ;;  %v148_v8 = vmul.f32 %v146_v62, %v146_v62 }
  0xba   :  { %v397_v18 = vsub.f32 %v395_v55, %v458_v4  ;;  %v276_v42 = vadd.f32 %v274_v14, %v149_v40 }
  0xbb   :  { %v394_v29 = vmin.f32 %v392_v53, %v390_v23  ;;  %v275_v54 = vadd.f32 %v273_v52, %v148_v8 }
  0xbc   :  { %v399_v41 = vmul.f32 %v397_v18, %v397_v18 }
  0xbd   :  { %v396_v60 = vsub.f32 %v394_v29, %v463_v5 }
  0xbe   :  { %v401_v0 = vadd.f32 %v399_v41, %v276_v42 }
  0xbf   :  { %v398_v32 = vmul.f32 %v396_v60, %v396_v60 }
  0xc0   :  { %404 = vst.msk [vmem:[%s736_s1 + $0x8] sm:$0xff] %vm402_vm6, %v401_v0 }
  0xc1   :  { %v400_v39 = vadd.f32 %v398_v32, %v275_v54 }
  0xc3   :  { %403 = vst.msk [vmem:[%s736_s1] sm:$0xff] %vm402_vm6, %v400_v39 }

</bundles_post_ra>
